<compile_context>
chip_gen: v7x
topology: tpu7x:2x2x1
jax: 0.10.0
libtpu: 0.0.40
codegen_flags: <defaults>
</compile_context>

<pallas_src>
import jax
import jax.numpy as jnp
import numpy as np
from jax.experimental import pallas as pl
from jax.experimental.pallas import tpu as pltpu


def attention_kernel(x_ref, w_ref, b_ref, o_ref):
    # x_ref: (TB, N, D_IN) tile of the input (TB batch rows per grid step).
    # w_ref: (1, D_IN)  effective key weight  (Wk @ Wq).
    # b_ref: (1, 1)     effective bias        (Wk @ bq).
    # o_ref: (TB, D_IN) lane-dense output tile.
    x = x_ref[...]                                            # (TB, N, D_IN) f32

    # dist[b, n] = sum_d x[b, n, d] * w_eff[d] + b_eff        -> (TB, N)
    # N lands on the lane axis, so the softmax reductions below are dense
    # lane-axis reductions (VPU multiply + XLU lane reduce; no MXU needed).
    dist = jnp.sum(x * w_ref[...], axis=-1) + b_ref[...]

    # Softmax over the sequence axis (axis=-1 == lane axis).
    m = jnp.max(dist, axis=-1, keepdims=True)
    e = jnp.exp(dist - m)
    att = e * pl.reciprocal(jnp.sum(e, axis=-1, keepdims=True), approx=False)

    # out[b, d] = sum_n att[b, n] * x[b, n, d]                -> (TB, D_IN)
    o_ref[...] = jnp.sum(att[:, :, None] * x, axis=1).astype(o_ref.dtype)


def _choose_batch_tile(B, N, D_IN, vmem_budget_bytes=8 << 20):
    """Pick TB = batch rows per grid step.

    As large as the VMEM budget allows (double-buffered f32 x tile), a multiple
    of 8 (sublane tiling) unless it covers the whole batch, and a divisor of B
    so every block is full."""
    per_row = 2 * N * D_IN * 4          # double-buffered f32 x bytes per batch row
    cap = max(1, vmem_budget_bytes // per_row)
    # Prefer >= 2 grid steps when cheap (lets v7x megacore split the batch).
    if B % 16 == 0 and (B // 2) <= cap:
        return B // 2
    for tb in range(min(B, cap), 0, -1):
        if B % tb == 0 and (tb % 8 == 0 or tb == B):
            return tb
    return B


def attention_forward(x, wq, bq, wk):
    """x: (B, N, dim_in); wq: (dim_out, dim_in); bq: (dim_out,); wk: (1, dim_out)."""
    B, N, D_IN = x.shape

    # One-time fold of Wk / bq into an effective vector & scalar (tiny matmuls,
    # done outside the kernel): dist = x @ w_eff + b_eff.
    w_eff = jnp.dot(wk, wq).reshape(1, D_IN).astype(jnp.float32)   # (1, D_IN)
    b_eff = jnp.dot(wk, bq).reshape(1, 1).astype(jnp.float32)      # (1, 1)

    TB = _choose_batch_tile(B, N, D_IN)

    out = pl.pallas_call(
        attention_kernel,
        out_shape=jax.ShapeDtypeStruct((B, D_IN), jnp.float32),
        grid_spec=pltpu.PrefetchScalarGridSpec(
            num_scalar_prefetch=0,
            grid=(B // TB,),
            in_specs=[
                pl.BlockSpec((TB, N, D_IN), lambda b: (b, 0, 0)),
                pl.BlockSpec((1, D_IN), lambda b: (0, 0)),
                pl.BlockSpec((1, 1), lambda b: (0, 0)),
            ],
            out_specs=pl.BlockSpec((TB, D_IN), lambda b: (b, 0)),
        ),
        compiler_params=pltpu.CompilerParams(
            dimension_semantics=("parallel",)),
    )(x, w_eff, b_eff)
    return out


def attention_ref(x, wq, bq, wk):
    # Un-folded reference, mirrors the PyTorch module exactly.
    q = jnp.einsum("bnd,od->bno", x, wq) + bq
    dist = jnp.einsum("bno,io->bn", q, wk)
    att = jax.nn.softmax(dist, axis=-1)
    return jnp.sum(att[..., None] * x, axis=1)


if __name__ == "__main__":
    B, N, D_IN, D_OUT = 2, 8, 32, 16
    key = jax.random.PRNGKey(0)
    kx, kwq, kbq, kwk = jax.random.split(key, 4)

    x = jax.random.normal(kx, (B, N, D_IN), dtype=jnp.float32)
    # Deterministic parameter init (PyTorch nn.Linear-style uniform bounds).
    bound_q = 1.0 / np.sqrt(D_IN)
    bound_k = 1.0 / np.sqrt(D_OUT)
    wq = jax.random.uniform(kwq, (D_OUT, D_IN), jnp.float32, -bound_q, bound_q)
    bq = jax.random.uniform(kbq, (D_OUT,), jnp.float32, -bound_q, bound_q)
    wk = jax.random.uniform(kwk, (1, D_OUT), jnp.float32, -bound_k, bound_k)

    out = attention_forward(x, wq, bq, wk)
    jax.block_until_ready(out)

    ref = attention_ref(x, wq, bq, wk)
    np.testing.assert_allclose(np.asarray(out), np.asarray(ref),
                               rtol=1e-4, atol=1e-5)
    print("KERNEL_OK")
</pallas_src>

<mosaic_0001>
module attributes {stable_mosaic.version = 11 : i64} {
  func.func @attention_kernel(%arg0: i32, %arg1: memref<2x8x32xf32, #tpu.memory_space<vmem>>, %arg2: memref<1x32xf32, #tpu.memory_space<vmem>>, %arg3: memref<1x1xf32, #tpu.memory_space<vmem>>, %arg4: memref<2x32xf32, #tpu.memory_space<vmem>>) attributes {dimension_semantics = [#tpu.dimension_semantics<parallel>], iteration_bounds = array<i64: 1>, scalar_prefetch = 0 : i64, scratch_operands = 0 : i64, tpu.core_type = #tpu.core_type<tc>, window_params = [{transform_indices = @transform_0, window_bounds = array<i64: 2, 8, 32>}, {pipeline_mode = #tpu.pipeline_mode<synchronous>, transform_indices = @transform_1, window_bounds = array<i64: 1, 32>}, {pipeline_mode = #tpu.pipeline_mode<synchronous>, transform_indices = @transform_2, window_bounds = array<i64: 1, 1>}, {transform_indices = @transform_3, window_bounds = array<i64: 2, 32>}]} {
    %c0 = arith.constant 0 : index
    %c0_0 = arith.constant 0 : index
    %c0_1 = arith.constant 0 : index
    %0 = vector.load %arg1[%c0, %c0_0, %c0_1] : memref<2x8x32xf32, #tpu.memory_space<vmem>>, vector<2x8x32xf32>
    %c0_2 = arith.constant 0 : index
    %c0_3 = arith.constant 0 : index
    %1 = vector.load %arg2[%c0_2, %c0_3] : memref<1x32xf32, #tpu.memory_space<vmem>>, vector<1x32xf32>
    %2 = vector.shape_cast %1 : vector<1x32xf32> to vector<1x1x32xf32>
    %3 = vector.broadcast %2 : vector<1x1x32xf32> to vector<2x8x32xf32>
    %4 = arith.mulf %0, %3 : vector<2x8x32xf32>
    %cst = arith.constant dense<0.000000e+00> : vector<2x8xf32>
    %5 = vector.multi_reduction <add>, %4, %cst [2] : vector<2x8x32xf32> to vector<2x8xf32>
    %c0_4 = arith.constant 0 : index
    %c0_5 = arith.constant 0 : index
    %6 = vector.load %arg3[%c0_4, %c0_5] : memref<1x1xf32, #tpu.memory_space<vmem>>, vector<1x1xf32>
    %7 = vector.broadcast %6 : vector<1x1xf32> to vector<2x8xf32>
    %8 = arith.addf %5, %7 : vector<2x8xf32>
    %cst_6 = arith.constant dense<0xFF800000> : vector<2xf32>
    %9 = vector.multi_reduction <maximumf>, %8, %cst_6 [1] : vector<2x8xf32> to vector<2xf32>
    %10 = vector.shape_cast %9 : vector<2xf32> to vector<2x1xf32>
    %11 = vector.broadcast %10 : vector<2x1xf32> to vector<2x8xf32>
    %12 = arith.subf %8, %11 : vector<2x8xf32>
    %13 = math.exp %12 : vector<2x8xf32>
    %cst_7 = arith.constant dense<0.000000e+00> : vector<2xf32>
    %14 = vector.multi_reduction <add>, %13, %cst_7 [1] : vector<2x8xf32> to vector<2xf32>
    %15 = vector.shape_cast %14 : vector<2xf32> to vector<2x1xf32>
    %16 = tpu.reciprocal %15 : vector<2x1xf32> -> vector<2x1xf32>
    %17 = vector.broadcast %16 : vector<2x1xf32> to vector<2x8xf32>
    %18 = arith.mulf %13, %17 : vector<2x8xf32>
    %19 = vector.shape_cast %18 : vector<2x8xf32> to vector<2x8x1xf32>
    %20 = vector.broadcast %19 : vector<2x8x1xf32> to vector<2x8x32xf32>
    %21 = arith.mulf %20, %0 : vector<2x8x32xf32>
    %cst_8 = arith.constant dense<0.000000e+00> : vector<2x32xf32>
    %22 = vector.multi_reduction <add>, %21, %cst_8 [1] : vector<2x8x32xf32> to vector<2x32xf32>
    %c0_9 = arith.constant 0 : index
    %c0_10 = arith.constant 0 : index
    %23 = vector.load %arg4[%c0_9, %c0_10] : memref<2x32xf32, #tpu.memory_space<vmem>>, vector<2x32xf32>
    tpu.vector_store %arg4[%c0_9, %c0_10], %22 {strides = array<i32>} : memref<2x32xf32, #tpu.memory_space<vmem>>, vector<2x32xf32>,
    return
  }
  func.func @transform_0(%arg0: i32) -> (i32, i32, i32) {
    %c0_i32 = arith.constant 0 : i32
    %c0_i32_0 = arith.constant 0 : i32
    %c0_i32_1 = arith.constant 0 : i32
    return %arg0, %c0_i32, %c0_i32_0 : i32, i32, i32
  }
  func.func @transform_1(%arg0: i32) -> (i32, i32) {
    %c0_i32 = arith.constant 0 : i32
    %c0_i32_0 = arith.constant 0 : i32
    %c0_i32_1 = arith.constant 0 : i32
    return %c0_i32, %c0_i32_0 : i32, i32
  }
  func.func @transform_2(%arg0: i32) -> (i32, i32) {
    %c0_i32 = arith.constant 0 : i32
    %c0_i32_0 = arith.constant 0 : i32
    %c0_i32_1 = arith.constant 0 : i32
    return %c0_i32, %c0_i32_0 : i32, i32
  }
  func.func @transform_3(%arg0: i32) -> (i32, i32) {
    %c0_i32 = arith.constant 0 : i32
    %c0_i32_0 = arith.constant 0 : i32
    return %arg0, %c0_i32 : i32, i32
  }
}

</mosaic_0001>

<bundles_post_ra>
// kernel: tpu_custom_call.1
= control target key start
LH: loop header
LB: loop body
LE: loop exit
PB: predicated region body
PF: predicated region fallthrough
CT: control target
= control target key end

     0   :  { %s306_s0 = inlined_call_operand.hbm [shape: f32[2,8,32], index: 0, kind: input, shape index: {}]   ;;  %s307_s1 = inlined_call_operand.vmem [shape: f32[1,32], index: 1, kind: input, shape index: {}]   ;;  %s308_s2 = inlined_call_operand.<no memory space> [shape: f32[1,1], index: 2, kind: input, shape index: {}]   ;;  %s309_s3 = inlined_call_operand.hbm [shape: f32[2,32], index: 3, kind: output, shape index: {}]  }
   0x1   :  { %v8_v0 = vstv %s308_s2 }
   0x2   :  { %9 = vst [vmem:[#allocation2] sm:$0x1] %v8_v0 }
   0x3   :  { %10 = vsyncpa [#allocation4], 0 }
   0x4   :  { %11 = vsyncpa [#allocation5], 0  ;;  %s242_s14 = smov [#allocation3]   ;;  %s194_s18 = scalar_lea.hbm %s306_s0, 256 }
   0x5   :  { %s17_s15 = sshll.u32 %s242_s14, 4  ;;  %p195_p0 = scmp.ne.s32.totalorder %s306_s0, %s194_s18  ;;  %s18_s15 = int_to_ptr.vmem [resolvable:$true] %s17_s15 }
   0x6   :  { %p198_p1 = scmp.lt.u32.totalorder %s194_s18, %s306_s0 }
   0x8   :  { %p200_p2 = pnand %p198_p1, %p195_p0 }
   0xa   :  { %203 = shalt.err (!%p200_p2)
}
   0xb   :  { %s204_s2 = scalar_lea.vmem %s18_s15, 256  ;;  %p209_p4 = scmp.lt.s32.totalorder %s18_s15, %s18_s15 }
   0xc   :  { %p205_p3 = scmp.ne.s32.totalorder %s18_s15, %s204_s2  ;;  %p210_p5 = scmp.lt.s32.totalorder %s204_s2, %s204_s2 }
   0xe   :  { %p211_p6 = por %p210_p5, %p209_p4 }
  0x10   :  { %p212_p7 = pnand %p211_p6, %p205_p3 }
  0x12   :  { %215 = shalt.err (!%p212_p7)
}
  0x13   :  { %s243_s23 = smov 128   ;;  %s244_s24 = smov 8  }
  0x14   :  { %23 = dma.hbm_to_vmem [thread:$0]  %s306_s0, 256, %s18_s15, [#allocation4], %s243_s23, %s243_s23, %s244_s24  }
  0x15   :  { %238 = dma.done.wait [#allocation4], 256  }
  0x16   :  { %239 = vsyncadd [#allocation4], 4294967040  ;;  %v245_v1 = vmov 0   ;;  %v31_v2 = vld [vmem:[#allocation3] sm:$0xff]  ;;  %v179_v3 = vld [vmem:[%s307_s1] ss:$0 sm:$0xff]  ;;  %v63_v10 = vlaneseq }
  0x17   :  { %186 = vset.pattern.permute.xlu1 %v245_v1  ;;  %187 = vset.pattern.permute.xlu0 %v245_v1  ;;  %vm42_vm0 = vcmask 261120   ;;  %v32_v4 = vld [vmem:[#allocation3 + $0x8] sm:$0xff]  ;;  %v40_v5 = vmul.f32 %v179_v3, %v31_v2  ;;  %v180_v7 = vld [vmem:[#allocation2] ss:$0 sm:$0xff]  ;;  %vm73_vm1 = vcmask 1041409   ;;  %vm76_vm2 = vcmask 58368  }
  0x18   :  { %v41_v6 = vmul.f32 %v179_v3, %v32_v4  ;;  %56 = vperm.xlu1 %186, %v180_v7   ;;  %v64_v11 = vand.u32 127, %v63_v10  ;;  %v66_v12 = vshrl.u32 %v63_v10, 7  ;;  %s246_s0 = smov [#allocation6]   ;;  %vm162_vm3 = vcmask 254976  }
  0x19   :  { %v43_v8 = vsel %vm42_vm0, %v40_v5, 0.0  ;;  %s170_s1 = sshll.u32 %s246_s0, 4  ;;  %s171_s1 = int_to_ptr.vmem [resolvable:$true] %s170_s1 }
  0x1a   :  { %44 = vadd.xlane.f32.xlu0 %v43_v8  ;;  %v46_v9 = vsel %vm42_vm0, %v41_v6, 0.0  ;;  %v67_v15 = vsub.s32 %v64_v11, %v66_v12  ;;  %v83_v23 = vsub.s32 0, %v66_v12  ;;  %v87_v24 = vsub.s32 1, %v66_v12  ;;  %s216_s29 = scalar_lea.vmem %s171_s1, 32  ;;  %p221_p9 = scmp.lt.s32.totalorder %s171_s1, %s171_s1 }
  0x1b   :  { %p217_p8 = scmp.ne.s32.totalorder %s171_s1, %s216_s29  ;;  %p222_p10 = scmp.lt.s32.totalorder %s216_s29, %s216_s29 }
  0x1d   :  { %p223_p11 = por %p222_p10, %p221_p9 }
  0x1e   :  { %47 = vadd.xlane.f32.xlu0 %v46_v9 }
  0x1f   :  { %p224_p12 = pnand %p223_p11, %p217_p8 }
  0x97   :  { %v57_v13 = vpop.permute.xlu1 %56 }
  0xa7   :  { %v45_v14 = vpop.xlane.xlu0 %44 }
  0xa8   :  { %v59_v16 = vadd.f32 %v57_v13, %v45_v14 }
  0xaa   :  { %v68_v19 = vrot.slane %v59_v16, %v67_v15 }
  0xab   :  { %v48_v17 = vpop.xlane.xlu0 %47 }
  0xac   :  { %v60_v18 = vadd.f32 %v57_v13, %v48_v17 }
  0xae   :  { %v72_v20 = vrot.slane %v60_v18, %v67_v15 }
  0xb0   :  { %v74_v21 = vsel %vm73_vm1, %v72_v20, %v68_v19 }
  0xb1   :  { %v77_v22 = vsel %vm76_vm2, %v74_v21, -inf }
  0xb2   :  { %78 = vmax.xlane.f32.xlu1 %v77_v22 }
 0x13f   :  { %v79_v25 = vpop.xlane.xlu1 %78 }
 0x140   :  { %v84_v26 = vrot.slane %v79_v25, %v83_v23  ;;  %v88_v27 = vrot.slane %v79_v25, %v87_v24 }
 0x142   :  { %v91_v28 = vsub.f32 %v59_v16, %v84_v26  ;;  %v92_v29 = vsub.f32 %v60_v18, %v88_v27 }
 0x144   :  { %v93_v30 = vmul.f32 1.442695, %v91_v28  ;;  %v95_v31 = vmul.f32 1.442695, %v92_v29 }
 0x146   :  { %188 = vpow2.f32 %v93_v30 }
 0x147   :  { %190 = vpow2.f32 %v95_v31 }
 0x150   :  { %v189_v32 = vpop.eup %188 }
 0x151   :  { %v191_v33 = vpop.eup %190  ;;  %100 = vperm.xlu0 %187, %v189_v32  }
 0x152   :  { %103 = vperm.xlu1 %186, %v191_v33  }
 0x1d0   :  { %v101_v34 = vpop.permute.xlu0 %100 }
 0x1d1   :  { %v104_v35 = vpop.permute.xlu1 %103  ;;  %v108_v36 = vrot.slane %v101_v34, %v67_v15 }
 0x1d2   :  { %v112_v37 = vrot.slane %v104_v35, %v67_v15 }
 0x1d4   :  { %v113_v38 = vsel %vm73_vm1, %v112_v37, %v108_v36 }
 0x1d5   :  { %v115_v39 = vsel %vm76_vm2, %v113_v38, 0.0 }
 0x1d6   :  { %116 = vadd.xlane.f32.xlu0 %v115_v39 }
 0x263   :  { %v117_v40 = vpop.xlane.xlu0 %116 }
 0x264   :  { %192 = vrcp.f32 %v117_v40 }
 0x26e   :  { %v193_v41 = vpop.eup %192 }
 0x26f   :  { %v123_v42 = vrot.slane %v193_v41, %v83_v23  ;;  %v127_v44 = vrot.slane %v193_v41, %v87_v24 }
 0x271   :  { %v130_v43 = vmul.f32 %v189_v32, %v123_v42  ;;  %v131_v45 = vmul.f32 %v191_v33, %v127_v44 }
 0x273   :  { %134 = vperm.xlu1 %186, %v130_v43  }
 0x277   :  { %139 = vperm.xlu1 %186, %v131_v45  }
 0x2f2   :  { %v135_v46 = vpop.permute.xlu1 %134 }
 0x2f3   :  { %v142_v47 = vmul.f32 %v135_v46, %v31_v2 }
 0x2f5   :  { %v144_v48 = vsel %vm42_vm0, %v142_v47, 0.0 }
 0x2f6   :  { %v145_v49 = vrot.slane %v144_v48, 4  ;;  %v140_v50 = vpop.permute.xlu1 %139 }
 0x2f7   :  { %v143_v51 = vmul.f32 %v140_v50, %v32_v4 }
 0x2f8   :  { %v146_v52 = vadd.f32 %v145_v49, %v144_v48 }
 0x2f9   :  { %v151_v53 = vsel %vm42_vm0, %v143_v51, 0.0 }
 0x2fa   :  { %v147_v54 = vrot.slane %v146_v52, 2  ;;  %v152_v55 = vrot.slane %v151_v53, 4 }
 0x2fc   :  { %v148_v56 = vadd.f32 %v147_v54, %v146_v52  ;;  %v153_v57 = vadd.f32 %v152_v55, %v151_v53 }
 0x2fe   :  { %v154_v58 = vrot.slane %v153_v57, 2  ;;  %v149_v59 = vrot.slane %v148_v56, 1 }
 0x300   :  { %v155_v60 = vadd.f32 %v154_v58, %v153_v57  ;;  %v150_v62 = vadd.f32 %v149_v59, %v148_v56 }
 0x302   :  { %v156_v61 = vrot.slane %v155_v60, 1 }
 0x304   :  { %v157_v63 = vadd.f32 %v156_v61, %v155_v60 }
 0x306   :  { %v160_v0 = vsel %vm73_vm1, %v157_v63, %v150_v62 }
 0x307   :  { %163 = vst.msk [vmem:[#allocation6] sm:$0x3] %vm162_vm3, %v160_v0 }
 0x308   :  { %227 = shalt.err (!%p224_p12)
}
 0x309   :  { %s228_s5 = scalar_lea.hbm %s309_s3, 32 }
 0x30a   :  { %p229_p13 = scmp.ne.s32.totalorder %s309_s3, %s228_s5  ;;  %p232_p0 = scmp.lt.u32.totalorder %s228_s5, %s309_s3 }
 0x30c   :  { %p234_p1 = pnand %p232_p0, %p229_p13 }
 0x30e   :  { %237 = shalt.err (!%p234_p1)
}
 0x30f   :  { %173 = dma.vmem_to_hbm [thread:$0]  %s171_s1, 32, %s309_s3, [#allocation5]  }
 0x310   :  { %240 = dma.done.wait [#allocation5], 32  }
 0x311   :  { %241 = vsyncadd [#allocation5], 4294967264 }
 0x312   :  { %177 = vsyncpa [#allocation4], 1 }
 0x313   :  { %178 = vsyncpa [#allocation5], 1 }

</bundles_post_ra>
